<compile_context>
chip_gen: v5e
topology: v5e:2x2
jax: 0.10.0
libtpu: 0.0.40
codegen_flags: <defaults>
</compile_context>

<pallas_src>
import jax
import jax.numpy as jnp
from jax.experimental import pallas as pl
from jax.experimental.pallas import tpu as pltpu


def _layer_scale_kernel(x_ref, g_ref, o_ref):
    # x_ref: (TR, TS) tile of flattened (NC, S); g_ref: (TR, 1) per-row gamma (same dtype).
    o_ref[...] = x_ref[...] * g_ref[...]


def _round_up(x, m):
    return ((x + m - 1) // m) * m


def _largest_divisor_tile(total, unit, cap):
    """Largest multiple of `unit` that divides `total` (a multiple of `unit`) and is <= cap."""
    n = total // unit
    max_k = max(1, cap // unit)
    best = 1
    k = 1
    while k * k <= n:
        if n % k == 0:
            if k <= max_k:
                best = max(best, k)
            if (n // k) <= max_k:
                best = max(best, n // k)
        k += 1
    return best * unit


def layer_scale_3d(x, gamma, *, target_block_bytes=2 * 1024 * 1024, max_ts=4096):
    """x: (N, C, D, H, W); gamma: (C, 1, 1, 1). Returns x * gamma broadcast over D, H, W."""
    N, C, D, H, W = x.shape
    NC = N * C
    S = D * H * W
    itemsize = jnp.dtype(x.dtype).itemsize
    sub = max(8, 32 // itemsize)  # packed sublane count: 8 f32, 16 bf16, 32 int8/fp8

    # --- tile / pad geometry ---------------------------------------------------
    S_pad = _round_up(S, 128)
    TS = _largest_divisor_tile(S_pad, 128, max_ts)

    NC_pad = _round_up(NC, sub)
    tr_cap = max(sub, target_block_bytes // (TS * itemsize))
    TR = _largest_divisor_tile(NC_pad, sub, tr_cap)

    # --- flatten + per-row gamma (cast once here; no per-step cast in the kernel)
    x2 = x.reshape(NC, S)
    g_rows = jnp.broadcast_to(gamma.reshape(1, C).astype(x.dtype), (N, C)).reshape(NC, 1)

    if NC_pad != NC or S_pad != S:
        x2 = jnp.pad(x2, ((0, NC_pad - NC), (0, S_pad - S)))
    if NC_pad != NC:
        g_rows = jnp.pad(g_rows, ((0, NC_pad - NC), (0, 0)))

    grid = (NC_pad // TR, S_pad // TS)

    out2 = pl.pallas_call(
        _layer_scale_kernel,
        out_shape=jax.ShapeDtypeStruct((NC_pad, S_pad), x.dtype),
        grid_spec=pltpu.PrefetchScalarGridSpec(
            num_scalar_prefetch=0,
            grid=grid,
            in_specs=[
                pl.BlockSpec((TR, TS), lambda i, j: (i, j)),   # x tile
                pl.BlockSpec((TR, 1), lambda i, j: (i, 0)),    # per-tile gamma rows
            ],
            out_specs=pl.BlockSpec((TR, TS), lambda i, j: (i, j)),
        ),
        compiler_params=pltpu.CompilerParams(
            dimension_semantics=("parallel", "parallel"),
            vmem_limit_bytes=32 * 1024 * 1024,
        ),
    )(x2, g_rows)

    if NC_pad != NC or S_pad != S:
        out2 = out2[:NC, :S]
    return out2.reshape(N, C, D, H, W)


if __name__ == "__main__":
    key = jax.random.PRNGKey(0)
    k1, k2 = jax.random.split(key)
    init_values = 1e-5

    # Primary small shape consistent with a 3D conv feature map: (N, C, D, H, W)
    N, C, D, H, W = 2, 4, 8, 8, 8
    x = jax.random.normal(k1, (N, C, D, H, W), dtype=jnp.float32)
    gamma = jnp.full((C, 1, 1, 1), init_values, dtype=jnp.float32)

    out = jax.block_until_ready(layer_scale_3d(x, gamma))
    ref = x * gamma[None, ...]
    assert out.shape == x.shape and out.dtype == x.dtype
    assert jnp.allclose(out, ref, atol=1e-6, rtol=1e-6)

    # Ragged shape: NC not a multiple of 8 and D*H*W not a multiple of 128
    # (exercises the wrapper-side padding path).
    N2, C2, D2, H2, W2 = 1, 3, 4, 5, 6
    x2 = jax.random.normal(k2, (N2, C2, D2, H2, W2), dtype=jnp.float32)
    gamma2 = jnp.full((C2, 1, 1, 1), init_values, dtype=jnp.float32)

    out2 = jax.block_until_ready(layer_scale_3d(x2, gamma2))
    ref2 = x2 * gamma2[None, ...]
    assert out2.shape == x2.shape and out2.dtype == x2.dtype
    assert jnp.allclose(out2, ref2, atol=1e-6, rtol=1e-6)

    # TODO(synk): inplace=True (x.mul_) has no JAX equivalent; functional output returned instead.
    print("KERNEL_OK")
</pallas_src>

<mosaic_0001>
module attributes {stable_mosaic.version = 11 : i64} {
  func.func @_layer_scale_kernel(%arg0: i32, %arg1: i32, %arg2: memref<8x512xf32, #tpu.memory_space<vmem>>, %arg3: memref<8x1xf32, #tpu.memory_space<vmem>>, %arg4: memref<8x512xf32, #tpu.memory_space<vmem>>) attributes {dimension_semantics = [#tpu.dimension_semantics<parallel>, #tpu.dimension_semantics<parallel>], iteration_bounds = array<i64: 1, 1>, scalar_prefetch = 0 : i64, scratch_operands = 0 : i64, tpu.core_type = #tpu.core_type<tc>, window_params = [{transform_indices = @transform_0, window_bounds = array<i64: 8, 512>}, {transform_indices = @transform_1, window_bounds = array<i64: 8, 1>}, {transform_indices = @transform_2, window_bounds = array<i64: 8, 512>}]} {
    %c0 = arith.constant 0 : index
    %c0_0 = arith.constant 0 : index
    %0 = vector.load %arg2[%c0, %c0_0] : memref<8x512xf32, #tpu.memory_space<vmem>>, vector<8x512xf32>
    %c0_1 = arith.constant 0 : index
    %c0_2 = arith.constant 0 : index
    %1 = vector.load %arg3[%c0_1, %c0_2] : memref<8x1xf32, #tpu.memory_space<vmem>>, vector<8x1xf32>
    %2 = vector.broadcast %1 : vector<8x1xf32> to vector<8x512xf32>
    %3 = arith.mulf %0, %2 : vector<8x512xf32>
    %c0_3 = arith.constant 0 : index
    %c0_4 = arith.constant 0 : index
    %4 = vector.load %arg4[%c0_3, %c0_4] : memref<8x512xf32, #tpu.memory_space<vmem>>, vector<8x512xf32>
    tpu.vector_store %arg4[%c0_3, %c0_4], %3 {strides = array<i32>} : memref<8x512xf32, #tpu.memory_space<vmem>>, vector<8x512xf32>,
    return
  }
  func.func @transform_0(%arg0: i32, %arg1: i32) -> (i32, i32) {
    %c0_i32 = arith.constant 0 : i32
    return %arg0, %arg1 : i32, i32
  }
  func.func @transform_1(%arg0: i32, %arg1: i32) -> (i32, i32) {
    %c0_i32 = arith.constant 0 : i32
    %c0_i32_0 = arith.constant 0 : i32
    return %arg0, %c0_i32 : i32, i32
  }
  func.func @transform_2(%arg0: i32, %arg1: i32) -> (i32, i32) {
    %c0_i32 = arith.constant 0 : i32
    return %arg0, %arg1 : i32, i32
  }
}

</mosaic_0001>

<bundles_post_ra>
// kernel: tpu_custom_call.1
= control target key start
LH: loop header
LB: loop body
LE: loop exit
PB: predicated region body
PF: predicated region fallthrough
CT: control target
= control target key end

     0   :  { %7 = vsyncpa [#allocation3], 0  ;;  %s144_s0 = inlined_call_operand.hbm [shape: f32[8,512], index: 0, kind: input, shape index: {}]   ;;  %s145_s1 = inlined_call_operand.vmem [shape: f32[8,1], index: 1, kind: input, shape index: {}]   ;;  %s146_s2 = inlined_call_operand.hbm [shape: f32[8,512], index: 2, kind: output, shape index: {}]  }
   0x1   :  { %8 = vsyncpa [#allocation4], 0  ;;  %s14_s11 = sshll.u32 %s144_s0, 4  ;;  %s117_s12 = smov [#allocation2]   ;;  %s15_s11 = int_to_ptr.hbm [resolvable:$true] %s14_s11 }
   0x2   :  { %s16_s13 = sshll.u32 %s117_s12, 4  ;;  %s17_s13 = int_to_ptr.vmem [resolvable:$true] %s16_s13 }
   0x3   :  { %19 = dma.hbm_to_vmem [thread:$0]  %s15_s11, 512, %s17_s13, [#allocation3]  }
   0x4   :  { %113 = dma.done.wait [#allocation3], 512  }
   0x5   :  { %114 = vsyncadd [#allocation3], 4294966784  ;;  %v118_v0 = vmov 0   ;;  %v30_v1 = vld [vmem:[%s145_s1] sm:$0xff]  ;;  %v27_v3 = vld [vmem:[#allocation2 + $0x8] sm:$0xff]  ;;  %s119_s0 = smov [#allocation5]  }
   0x6   :  { %64 = vset.pattern.permute.xlu0 %v118_v0  ;;  %v26_v2 = vld [vmem:[#allocation2] sm:$0xff]  ;;  %v28_v4 = vld [vmem:[#allocation2 + $0x10] sm:$0xff]  ;;  %v29_v5 = vld [vmem:[#allocation2 + $0x18] sm:$0xff]  ;;  %s49_s16 = sshll.u32 %s119_s0, 4  ;;  %s51_s19 = sshll.u32 %s146_s2, 4  ;;  %s50_s16 = int_to_ptr.vmem [resolvable:$true] %s49_s16  ;;  %s52_s19 = int_to_ptr.hbm [resolvable:$true] %s51_s19 }
   0x7   :  { %33 = vperm.xlu0 %64, %v30_v1  }
  0x79   :  { %v34_v6 = vpop.permute.xlu0 %33 }
  0x7a   :  { %v36_v7 = vmul.f32 %v34_v6, %v26_v2  ;;  %v37_v8 = vmul.f32 %v34_v6, %v27_v3  ;;  %v38_v9 = vmul.f32 %v34_v6, %v28_v4  ;;  %v39_v10 = vmul.f32 %v34_v6, %v29_v5 }
  0x7c   :  { %40 = vst [vmem:[#allocation5] sm:$0xff] %v36_v7 }
  0x7d   :  { %41 = vst [vmem:[#allocation5 + $0x8] sm:$0xff] %v37_v8 }
  0x7e   :  { %42 = vst [vmem:[#allocation5 + $0x10] sm:$0xff] %v38_v9 }
  0x7f   :  { %43 = vst [vmem:[#allocation5 + $0x18] sm:$0xff] %v39_v10 }
  0x80   :  { %54 = dma.vmem_to_hbm [thread:$0]  %s50_s16, 512, %s52_s19, [#allocation4]  }
  0x81   :  { %115 = dma.done.wait [#allocation4], 512  }
  0x82   :  { %116 = vsyncadd [#allocation4], 4294966784 }
  0x83   :  { %59 = vsyncpa [#allocation3], 1 }
  0x84   :  { %60 = vsyncpa [#allocation4], 1 }

</bundles_post_ra>
